<compile_context>
chip_gen: v7x
topology: tpu7x:2x2x1
jax: 0.10.0
libtpu: 0.0.40
codegen_flags: <defaults>
</compile_context>

<pallas_src>
from functools import partial

import jax
import jax.numpy as jnp
from jax.experimental import pallas as pl
from jax.experimental.pallas import tpu as pltpu

IN_F = 784      # fc1 in_features
IN_PAD = 896    # 784 padded up to a multiple of 128 (zero-padded, no effect on math)
HID = 256       # fc1 out_features / fc2 in_features
OUT_F = 10      # fc2 out_features
OUT_PAD = 128   # lane-dense output width (zero-padded columns, sliced off outside)


def _round_up(x, m):
    return (x + m - 1) // m * m


def mlp_kernel(x_ref, w1_ref, b1_ref, w2_ref, b2_ref, o_ref):
    # fc1: (TB, 896)bf16 @ (896, 256)bf16 -> f32 accumulate, + bias, ReLU
    h = jnp.dot(x_ref[...], w1_ref[...], preferred_element_type=jnp.float32)
    h = jnp.maximum(h + b1_ref[...], 0.0)
    # fc2: (TB, 256)bf16 @ (256, 128)bf16 -> f32 accumulate, + bias (lane-dense store)
    o_ref[...] = (
        jnp.dot(h.astype(jnp.bfloat16), w2_ref[...], preferred_element_type=jnp.float32)
        + b2_ref[...]
    )


def prepare_params(w1, b1, w2, b2):
    """One-time prep from PyTorch-layout params.

    w1: (256, 784), b1: (256,), w2: (10, 256), b2: (10,)  ->
    w1p: (896, 256) bf16, b1p: (1, 256) f32, w2p: (256, 128) bf16, b2p: (1, 128) f32
    """
    w1p = (
        jnp.zeros((IN_PAD, HID), jnp.float32)
        .at[:IN_F, :]
        .set(jnp.asarray(w1, jnp.float32).T)
        .astype(jnp.bfloat16)
    )
    b1p = jnp.asarray(b1, jnp.float32).reshape(1, HID)
    w2p = (
        jnp.zeros((HID, OUT_PAD), jnp.float32)
        .at[:, :OUT_F]
        .set(jnp.asarray(w2, jnp.float32).T)
        .astype(jnp.bfloat16)
    )
    b2p = jnp.zeros((1, OUT_PAD), jnp.float32).at[:, :OUT_F].set(jnp.asarray(b2, jnp.float32))
    return w1p, b1p, w2p, b2p


@partial(jax.jit, static_argnames=("block_b",))
def mlp_forward(x, w1p, b1p, w2p, b2p, block_b=512):
    """x: (B, 784) f32; prepared params from prepare_params(). Returns (B, 10) f32."""
    B = x.shape[0]
    # Batch tile: up to `block_b` rows.  512x896 bf16 x-tile ~0.9 MiB, double
    # buffered ~1.8 MiB -> well inside the 16/32/32 MiB scoped-VMEM budgets of
    # v5e/v6e/v7x while still amortizing the ~0.35 us per-grid-step overhead.
    # Tiny batches are rounded to a multiple of 8 instead of a full tile.
    TB = min(block_b, _round_up(B, 8))
    B_pad = _round_up(B, TB)
    grid = B_pad // TB

    # Pad batch + feature dims and cast activations to bf16 for the MXU
    # (single fused pad/cast op under jit).
    xp = jnp.zeros((B_pad, IN_PAD), jnp.bfloat16).at[:B, :IN_F].set(x.astype(jnp.bfloat16))

    full = lambda i: (0, 0)  # constant block index -> buffer stays resident, no re-DMA
    out_padded = pl.pallas_call(
        mlp_kernel,
        out_shape=jax.ShapeDtypeStruct((B_pad, OUT_PAD), jnp.float32),
        grid=(grid,),
        in_specs=[
            pl.BlockSpec((TB, IN_PAD), lambda i: (i, 0)),   # x tile, pipelined over batch
            pl.BlockSpec((IN_PAD, HID), full),              # w1 resident across all steps
            pl.BlockSpec((1, HID), full),                   # b1
            pl.BlockSpec((HID, OUT_PAD), full),             # w2 (padded to 128 lanes)
            pl.BlockSpec((1, OUT_PAD), full),               # b2 (padded)
        ],
        out_specs=pl.BlockSpec((TB, OUT_PAD), lambda i: (i, 0)),
        compiler_params=pltpu.CompilerParams(
            dimension_semantics=("parallel",),              # shard batch axis across TCs (v7x)
            vmem_limit_bytes=32 * 1024 * 1024,
        ),
        cost_estimate=pl.CostEstimate(
            flops=2 * B_pad * (IN_PAD * HID + HID * OUT_PAD),
            transcendentals=0,
            bytes_accessed=(
                B_pad * IN_PAD * 2          # x (bf16)
                + IN_PAD * HID * 2          # w1 (bf16)
                + HID * OUT_PAD * 2         # w2 (bf16)
                + (HID + OUT_PAD) * 4       # biases (f32)
                + B_pad * OUT_PAD * 4       # out (f32)
            ),
        ),
    )(xp, w1p, b1p, w2p, b2p)

    return out_padded[:B, :OUT_F]


def torch_model_forward(x, w1, b1, w2, b2):
    """Convenience wrapper taking raw PyTorch-layout params (prep done per call)."""
    return mlp_forward(x, *prepare_params(w1, b1, w2, b2))


def init_params(key):
    """Deterministic parameter init matching nn.Linear shapes (out_features, in_features)."""
    k1, k2, k3, k4 = jax.random.split(key, 4)
    bound1 = 1.0 / jnp.sqrt(784.0)
    bound2 = 1.0 / jnp.sqrt(256.0)
    w1 = jax.random.uniform(k1, (256, 784), jnp.float32, -bound1, bound1)
    b1 = jax.random.uniform(k2, (256,), jnp.float32, -bound1, bound1)
    w2 = jax.random.uniform(k3, (10, 256), jnp.float32, -bound2, bound2)
    b2 = jax.random.uniform(k4, (10,), jnp.float32, -bound2, bound2)
    return w1, b1, w2, b2


if __name__ == "__main__":
    key = jax.random.PRNGKey(0)
    kx, kp = jax.random.split(key)
    B = 8
    x = jax.random.normal(kx, (B, 784), jnp.float32)
    w1, b1, w2, b2 = init_params(kp)

    # One-time weight prep (pre-transpose / pad / bf16 cast), then the gridded kernel.
    params = prepare_params(w1, b1, w2, b2)
    out = mlp_forward(x, *params)
    out = jax.block_until_ready(out)

    assert out.shape == (B, 10)

    # Exact-semantics reference in f32 (PyTorch math); loose tol for bf16 MXU inputs.
    ref_f32 = jnp.maximum(x @ w1.T + b1, 0.0) @ w2.T + b2
    assert jnp.allclose(out, ref_f32, atol=2e-2, rtol=2e-2)

    # Same-precision reference (bf16 inputs, f32 accumulate); tight tolerance.
    xb = x.astype(jnp.bfloat16)
    h_ref = jnp.maximum(
        jnp.dot(xb, w1.T.astype(jnp.bfloat16), preferred_element_type=jnp.float32) + b1, 0.0
    )
    ref_bf16 = (
        jnp.dot(h_ref.astype(jnp.bfloat16), w2.T.astype(jnp.bfloat16),
                preferred_element_type=jnp.float32) + b2
    )
    assert jnp.allclose(out, ref_bf16, atol=1e-3, rtol=1e-3)

    print("KERNEL_OK")
</pallas_src>

<mosaic_0001>
module attributes {stable_mosaic.version = 11 : i64} {
  func.func @mlp_kernel(%arg0: i32, %arg1: memref<8x896xbf16, #tpu.memory_space<vmem>>, %arg2: memref<896x256xbf16, #tpu.memory_space<vmem>>, %arg3: memref<1x256xf32, #tpu.memory_space<vmem>>, %arg4: memref<256x128xbf16, #tpu.memory_space<vmem>>, %arg5: memref<1x128xf32, #tpu.memory_space<vmem>>, %arg6: memref<8x128xf32, #tpu.memory_space<vmem>>) attributes {dimension_semantics = [#tpu.dimension_semantics<parallel>], iteration_bounds = array<i64: 1>, scalar_prefetch = 0 : i64, scratch_operands = 0 : i64, tpu.core_type = #tpu.core_type<tc>, window_params = [{transform_indices = @transform_0, window_bounds = array<i64: 8, 896>}, {pipeline_mode = #tpu.pipeline_mode<synchronous>, transform_indices = @transform_1, window_bounds = array<i64: 896, 256>}, {pipeline_mode = #tpu.pipeline_mode<synchronous>, transform_indices = @transform_2, window_bounds = array<i64: 1, 256>}, {pipeline_mode = #tpu.pipeline_mode<synchronous>, transform_indices = @transform_3, window_bounds = array<i64: 256, 128>}, {pipeline_mode = #tpu.pipeline_mode<synchronous>, transform_indices = @transform_4, window_bounds = array<i64: 1, 128>}, {transform_indices = @transform_5, window_bounds = array<i64: 8, 128>}]} {
    %c0 = arith.constant 0 : index
    %c0_0 = arith.constant 0 : index
    %0 = vector.load %arg1[%c0, %c0_0] : memref<8x896xbf16, #tpu.memory_space<vmem>>, vector<8x896xbf16>
    %c0_1 = arith.constant 0 : index
    %c0_2 = arith.constant 0 : index
    %1 = vector.load %arg2[%c0_1, %c0_2] : memref<896x256xbf16, #tpu.memory_space<vmem>>, vector<896x256xbf16>
    %cst = arith.constant dense<0.000000e+00> : vector<8x256xf32>
    %2 = tpu.matmul %0, %1, %cst {dimension_numbers = #tpu.dot_dimension_numbers<[1], [0], [0], [1], [0, 0, 1, 1], [], []>} : vector<8x896xbf16>, vector<896x256xbf16>, vector<8x256xf32> -> vector<8x256xf32>
    %c0_3 = arith.constant 0 : index
    %c0_4 = arith.constant 0 : index
    %3 = vector.load %arg3[%c0_3, %c0_4] : memref<1x256xf32, #tpu.memory_space<vmem>>, vector<1x256xf32>
    %4 = vector.broadcast %3 : vector<1x256xf32> to vector<8x256xf32>
    %5 = arith.addf %2, %4 : vector<8x256xf32>
    %cst_5 = arith.constant 0.000000e+00 : f32
    %6 = vector.broadcast %cst_5 : f32 to vector<8x256xf32>
    %7 = arith.maximumf %5, %6 : vector<8x256xf32>
    %8 = arith.truncf %7 : vector<8x256xf32> to vector<8x256xbf16>
    %c0_6 = arith.constant 0 : index
    %c0_7 = arith.constant 0 : index
    %9 = vector.load %arg4[%c0_6, %c0_7] : memref<256x128xbf16, #tpu.memory_space<vmem>>, vector<256x128xbf16>
    %cst_8 = arith.constant dense<0.000000e+00> : vector<8x128xf32>
    %10 = tpu.matmul %8, %9, %cst_8 {dimension_numbers = #tpu.dot_dimension_numbers<[1], [0], [0], [1], [0, 0, 1, 1], [], []>} : vector<8x256xbf16>, vector<256x128xbf16>, vector<8x128xf32> -> vector<8x128xf32>
    %c0_9 = arith.constant 0 : index
    %c0_10 = arith.constant 0 : index
    %11 = vector.load %arg5[%c0_9, %c0_10] : memref<1x128xf32, #tpu.memory_space<vmem>>, vector<1x128xf32>
    %12 = vector.broadcast %11 : vector<1x128xf32> to vector<8x128xf32>
    %13 = arith.addf %10, %12 : vector<8x128xf32>
    %c0_11 = arith.constant 0 : index
    %c0_12 = arith.constant 0 : index
    %14 = vector.load %arg6[%c0_11, %c0_12] : memref<8x128xf32, #tpu.memory_space<vmem>>, vector<8x128xf32>
    tpu.vector_store %arg6[%c0_11, %c0_12], %13 {strides = array<i32>} : memref<8x128xf32, #tpu.memory_space<vmem>>, vector<8x128xf32>,
    return
  }
  func.func @transform_0(%arg0: i32) -> (i32, i32) {
    %c0_i32 = arith.constant 0 : i32
    %c0_i32_0 = arith.constant 0 : i32
    return %arg0, %c0_i32 : i32, i32
  }
  func.func @transform_1(%arg0: i32) -> (i32, i32) {
    %c0_i32 = arith.constant 0 : i32
    %c0_i32_0 = arith.constant 0 : i32
    %c0_i32_1 = arith.constant 0 : i32
    return %c0_i32, %c0_i32_0 : i32, i32
  }
  func.func @transform_2(%arg0: i32) -> (i32, i32) {
    %c0_i32 = arith.constant 0 : i32
    %c0_i32_0 = arith.constant 0 : i32
    %c0_i32_1 = arith.constant 0 : i32
    return %c0_i32, %c0_i32_0 : i32, i32
  }
  func.func @transform_3(%arg0: i32) -> (i32, i32) {
    %c0_i32 = arith.constant 0 : i32
    %c0_i32_0 = arith.constant 0 : i32
    %c0_i32_1 = arith.constant 0 : i32
    return %c0_i32, %c0_i32_0 : i32, i32
  }
  func.func @transform_4(%arg0: i32) -> (i32, i32) {
    %c0_i32 = arith.constant 0 : i32
    %c0_i32_0 = arith.constant 0 : i32
    %c0_i32_1 = arith.constant 0 : i32
    return %c0_i32, %c0_i32_0 : i32, i32
  }
  func.func @transform_5(%arg0: i32) -> (i32, i32) {
    %c0_i32 = arith.constant 0 : i32
    %c0_i32_0 = arith.constant 0 : i32
    return %arg0, %c0_i32 : i32, i32
  }
}

</mosaic_0001>

<bundles_post_ra>
// kernel: mlp_forward.1
= control target key start
LH: loop header
LB: loop body
LE: loop exit
PB: predicated region body
PF: predicated region fallthrough
CT: control target
= control target key end

     0   :  { %10 = vsyncpa [#allocation3], 0  ;;  %s1657_s0 = inlined_call_operand.vmem [shape: bf16[8,896], index: 0, kind: input, shape index: {}]   ;;  %s1658_s1 = inlined_call_operand.hbm [shape: bf16[896,256], index: 1, kind: input, shape index: {}]   ;;  %s1659_s2 = inlined_call_operand.vmem [shape: f32[1,256], index: 2, kind: input, shape index: {}]   ;;  %s1660_s3 = inlined_call_operand.vmem [shape: bf16[256,128], index: 3, kind: input, shape index: {}]   ;;  %s1661_s4 = inlined_call_operand.vmem [shape: f32[1,128], index: 4, kind: input, shape index: {}]   ;;  %s1662_s5 = inlined_call_operand.hbm [shape: f32[8,128], index: 5, kind: output, shape index: {}]  }
   0x1   :  { %11 = vsyncpa [#allocation4], 0  ;;  %s1520_s18 = smov [#allocation2]   ;;  %s1472_s22 = scalar_lea.hbm %s1658_s1, 14336 }
   0x2   :  { %s19_s19 = sshll.u32 %s1520_s18, 4  ;;  %p1473_p0 = scmp.ne.s32.totalorder %s1658_s1, %s1472_s22  ;;  %s20_s19 = int_to_ptr.vmem [resolvable:$true] %s19_s19 }
   0x3   :  { %p1476_p1 = scmp.lt.u32.totalorder %s1472_s22, %s1658_s1 }
   0x5   :  { %p1478_p2 = pnand %p1476_p1, %p1473_p0 }
   0x7   :  { %1481 = shalt.err (!%p1478_p2)
}
   0x8   :  { %s1482_s27 = scalar_lea.vmem %s20_s19, 14336  ;;  %p1487_p4 = scmp.lt.s32.totalorder %s20_s19, %s20_s19 }
   0x9   :  { %p1483_p3 = scmp.ne.s32.totalorder %s20_s19, %s1482_s27  ;;  %p1488_p5 = scmp.lt.s32.totalorder %s1482_s27, %s1482_s27 }
   0xb   :  { %p1489_p6 = por %p1488_p5, %p1487_p4 }
   0xd   :  { %p1490_p7 = pnand %p1489_p6, %p1483_p3 }
   0xf   :  { %1493 = shalt.err (!%p1490_p7)
}
  0x10   :  { %s1521_s28 = smov 128   ;;  %s1522_s29 = smov 8  }
  0x11   :  { %25 = dma.hbm_to_vmem [thread:$0]  %s1658_s1, 14336, %s20_s19, [#allocation3], %s1521_s28, %s1521_s28, %s1522_s29  }
  0x12   :  { %1516 = dma.done.wait [#allocation3], 14336  }
  0x13   :  { %1517 = vsyncadd [#allocation3], 4294952960  ;;  %v1281_v0 = vld [vmem:[#allocation2 + $0x104] ss:$8 sps:$4 sm:$0xff]   ;;  %v1283_v1 = vld [vmem:[#allocation2 + $0x100] ss:$8 sps:$4 sm:$0xff]  }
  0x14   :  { %790 = vmatprep.subr.bf16.mxu0 %v1281_v0  ;;  %v1284_v2 = vld [vmem:[#allocation2 + $0x114] ss:$8 sps:$4 sm:$0xff]   ;;  %v1286_v3 = vld [vmem:[#allocation2 + $0x110] ss:$8 sps:$4 sm:$0xff]   ;;  %v1287_v4 = vld [vmem:[#allocation2 + $0x124] ss:$8 sps:$4 sm:$0xff]  }
  0x15   :  { %791 = vmatpush1.bf16.msra.mxu0 %v1283_v1  ;;  %v1289_v5 = vld [vmem:[#allocation2 + $0x120] ss:$8 sps:$4 sm:$0xff]   ;;  %v1290_v6 = vld [vmem:[#allocation2 + $0x134] ss:$8 sps:$4 sm:$0xff]   ;;  %v1292_v7 = vld [vmem:[#allocation2 + $0x130] ss:$8 sps:$4 sm:$0xff]  }
  0x16   :  { %792 = vmatprep.subr.bf16.mxu0 %v1284_v2  ;;  %v1305_v8 = vld [vmem:[#allocation2 + $0x4] ss:$8 sps:$4 sm:$0xff]   ;;  %v1307_v9 = vld [vmem:[#allocation2] ss:$8 sps:$4 sm:$0xff]   ;;  %v1311_v11 = vld [vmem:[#allocation2 + $0x14] ss:$8 sps:$4 sm:$0xff]  }
  0x17   :  { %v1293_v10 = vld [vmem:[#allocation2 + $0x144] ss:$8 sps:$4 sm:$0xff]   ;;  %749 = vmatprep.subr.bf16.mxu1 %v1305_v8  ;;  %v1313_v12 = vld [vmem:[#allocation2 + $0x10] ss:$8 sps:$4 sm:$0xff]   ;;  %v1295_v13 = vld [vmem:[#allocation2 + $0x140] ss:$8 sps:$4 sm:$0xff]  }
  0x18   :  { %750 = vmatpush1.bf16.msra.mxu1 %v1307_v9  ;;  %v1296_v14 = vld [vmem:[#allocation2 + $0x154] ss:$8 sps:$4 sm:$0xff]   ;;  %v1317_v15 = vld [vmem:[#allocation2 + $0x24] ss:$8 sps:$4 sm:$0xff]   ;;  %v1319_v16 = vld [vmem:[#allocation2 + $0x20] ss:$8 sps:$4 sm:$0xff]  }
  0x19   :  { %793 = vmatpush1.bf16.msra.mxu0 %v1286_v3  ;;  %751 = vmatprep.subr.bf16.mxu1 %v1311_v11  ;;  %v1298_v17 = vld [vmem:[#allocation2 + $0x150] ss:$8 sps:$4 sm:$0xff]   ;;  %v1323_v18 = vld [vmem:[#allocation2 + $0x34] ss:$8 sps:$4 sm:$0xff]   ;;  %v1299_v19 = vld [vmem:[#allocation2 + $0x164] ss:$8 sps:$4 sm:$0xff]  }
  0x1a   :  { %794 = vmatprep.subr.bf16.mxu0 %v1287_v4  ;;  %v1325_v20 = vld [vmem:[#allocation2 + $0x30] ss:$8 sps:$4 sm:$0xff]   ;;  %v1301_v21 = vld [vmem:[#allocation2 + $0x160] ss:$8 sps:$4 sm:$0xff]   ;;  %v1329_v22 = vld [vmem:[#allocation2 + $0x44] ss:$8 sps:$4 sm:$0xff]  }
  0x1b   :  { %v1302_v23 = vld [vmem:[#allocation2 + $0x174] ss:$8 sps:$4 sm:$0xff]   ;;  %v1331_v24 = vld [vmem:[#allocation2 + $0x40] ss:$8 sps:$4 sm:$0xff]   ;;  %v1304_v25 = vld [vmem:[#allocation2 + $0x170] ss:$8 sps:$4 sm:$0xff]  }
  0x1c   :  { %752 = vmatpush1.bf16.msra.mxu1 %v1313_v12  ;;  %v1335_v26 = vld [vmem:[#allocation2 + $0x54] ss:$8 sps:$4 sm:$0xff]   ;;  %v1308_v27 = vld [vmem:[#allocation2 + $0x184] ss:$8 sps:$4 sm:$0xff]   ;;  %v1337_v28 = vld [vmem:[#allocation2 + $0x50] ss:$8 sps:$4 sm:$0xff]  }
  0x1d   :  { %795 = vmatpush1.bf16.msra.mxu0 %v1289_v5  ;;  %753 = vmatprep.subr.bf16.mxu1 %v1317_v15  ;;  %v1310_v29 = vld [vmem:[#allocation2 + $0x180] ss:$8 sps:$4 sm:$0xff]   ;;  %v1341_v30 = vld [vmem:[#allocation2 + $0x64] ss:$8 sps:$4 sm:$0xff]   ;;  %v1314_v31 = vld [vmem:[#allocation2 + $0x194] ss:$8 sps:$4 sm:$0xff]  }
  0x1e   :  { %796 = vmatprep.subr.bf16.mxu0 %v1290_v6  ;;  %v1570_v32 = vld [vmem:[%s1657_s0 + $0x8] sm:$0xff]  ;;  %v1316_v33 = vld [vmem:[#allocation2 + $0x190] ss:$8 sps:$4 sm:$0xff]   ;;  %v1347_v36 = vld [vmem:[#allocation2 + $0x74] ss:$8 sps:$4 sm:$0xff]   ;;  %s1524_s20 = smov [#allocation5]  }
  0x1f   :  { %v1343_v34 = vld [vmem:[#allocation2 + $0x60] ss:$8 sps:$4 sm:$0xff]   ;;  %v1111_v35 = vcombine.high %v1570_v32, %v1570_v32  ;;  %v1320_v37 = vld [vmem:[#allocation2 + $0x1a4] ss:$8 sps:$4 sm:$0xff]   ;;  %v1349_v39 = vld [vmem:[#allocation2 + $0x70] ss:$8 sps:$4 sm:$0xff]   ;;  %v1110_v1 = vcombine.low %v1570_v32, %v1570_v32 }
  0x20   :  { %754 = vmatpush1.bf16.msra.mxu1 %v1319_v16  ;;  %v1322_v38 = vld [vmem:[#allocation2 + $0x1a0] ss:$8 sps:$4 sm:$0xff]   ;;  %v1353_v40 = vld [vmem:[#allocation2 + $0x84] ss:$8 sps:$4 sm:$0xff]   ;;  %v1326_v41 = vld [vmem:[#allocation2 + $0x1b4] ss:$8 sps:$4 sm:$0xff]  }
  0x21   :  { %797 = vmatpush1.bf16.msra.mxu0 %v1292_v7  ;;  %755 = vmatprep.subr.bf16.mxu1 %v1323_v18  ;;  %v1328_v42 = vld [vmem:[#allocation2 + $0x1b0] ss:$8 sps:$4 sm:$0xff]   ;;  %v1355_v43 = vld [vmem:[#allocation2 + $0x80] ss:$8 sps:$4 sm:$0xff]   ;;  %v1361_v44 = vld [vmem:[#allocation2 + $0x94] ss:$8 sps:$4 sm:$0xff]  }
  0x22   :  { %798 = vmatprep.subr.bf16.mxu0 %v1293_v10  ;;  %822 = vmatprep.mubr.bf16.mxu0 %v1111_v35  ;;  %v1332_v45 = vld [vmem:[#allocation2 + $0x1c4] ss:$8 sps:$4 sm:$0xff]   ;;  %v1334_v46 = vld [vmem:[#allocation2 + $0x1c0] ss:$8 sps:$4 sm:$0xff]   ;;  %v1363_v47 = vld [vmem:[#allocation2 + $0x90] ss:$8 sps:$4 sm:$0xff]  }
  0x23   :  { %v1367_v48 = vld [vmem:[#allocation2 + $0xa4] ss:$8 sps:$4 sm:$0xff]   ;;  %v1338_v49 = vld [vmem:[#allocation2 + $0x1d4] ss:$8 sps:$4 sm:$0xff]   ;;  %v1340_v50 = vld [vmem:[#allocation2 + $0x1d0] ss:$8 sps:$4 sm:$0xff]  }
  0x24   :  { %756 = vmatpush1.bf16.msra.mxu1 %v1325_v20  ;;  %v1369_v51 = vld [vmem:[#allocation2 + $0xa0] ss:$8 sps:$4 sm:$0xff]   ;;  %v1373_v52 = vld [vmem:[#allocation2 + $0xb4] ss:$8 sps:$4 sm:$0xff]   ;;  %v1344_v53 = vld [vmem:[#allocation2 + $0x1e4] ss:$8 sps:$4 sm:$0xff]  }
  0x25   :  { %799 = vmatpush1.bf16.msra.mxu0 %v1295_v13  ;;  %757 = vmatprep.subr.bf16.mxu1 %v1329_v22  ;;  %v1346_v54 = vld [vmem:[#allocation2 + $0x1e0] ss:$8 sps:$4 sm:$0xff]   ;;  %v1375_v56 = vld [vmem:[#allocation2 + $0xb0] ss:$8 sps:$4 sm:$0xff]   ;;  %v1379_v58 = vld [vmem:[#allocation2 + $0xc4] ss:$8 sps:$4 sm:$0xff]  }
  0x26   :  { %800 = vmatprep.subr.bf16.mxu0 %v1296_v14  ;;  %v36_v55 = vld [vmem:[%s1657_s0] sm:$0xff]  ;;  %v1350_v59 = vld [vmem:[#allocation2 + $0x1f4] ss:$8 sps:$4 sm:$0xff]   ;;  %v1352_v60 = vld [vmem:[#allocation2 + $0x1f0] ss:$8 sps:$4 sm:$0xff]   ;;  %s1099_s21 = sshll.u32 %s1524_s20, 4  ;;  %s1100_s21 = int_to_ptr.vmem [resolvable:$true] %s1099_s21 }
  0x27   :  { %v1109_v57 = vcombine.high %v36_v55, %v36_v55  ;;  %v1381_v61 = vld [vmem:[#allocation2 + $0xc0] ss:$8 sps:$4 sm:$0xff]   ;;  %v1385_v62 = vld [vmem:[#allocation2 + $0xd4] ss:$8 sps:$4 sm:$0xff]   ;;  %v1360_v63 = vld [vmem:[#allocation2 + $0x204] ss:$8 sps:$4 sm:$0xff]   ;;  %v1108_v14 = vcombine.low %v36_v55, %v36_v55  ;;  %p1499_p9 = scmp.lt.s32.totalorder %s1100_s21, %s1100_s21 }
  0x28   :  { %758 = vmatpush1.bf16.msra.mxu1 %v1331_v24  ;;  %v1358_v0 = vld [vmem:[#allocation2 + $0x200] ss:$8 sps:$4 sm:$0xff]   ;;  %v1387_v2 = vld [vmem:[#allocation2 + $0xd0] ss:$8 sps:$4 sm:$0xff]   ;;  %v1391_v3 = vld [vmem:[#allocation2 + $0xe4] ss:$8 sps:$4 sm:$0xff]  }
  0x29   :  { %801 = vmatpush1.bf16.msra.mxu0 %v1298_v17  ;;  %759 = vmatprep.subr.bf16.mxu1 %v1335_v26  ;;  %v1366_v4 = vld [vmem:[#allocation2 + $0x214] ss:$8 sps:$4 sm:$0xff]   ;;  %v1364_v5 = vld [vmem:[#allocation2 + $0x210] ss:$8 sps:$4 sm:$0xff]   ;;  %v1393_v6 = vld [vmem:[#allocation2 + $0xe0] ss:$8 sps:$4 sm:$0xff]  }
  0x2a   :  { %802 = vmatprep.subr.bf16.mxu0 %v1299_v19  ;;  %781 = vmatprep.mubr.bf16.mxu1 %v1109_v57  ;;  %v1397_v7 = vld [vmem:[#allocation2 + $0xf4] ss:$8 sps:$4 sm:$0xff]   ;;  %v1372_v8 = vld [vmem:[#allocation2 + $0x224] ss:$8 sps:$4 sm:$0xff]   ;;  %v1370_v9 = vld [vmem:[#allocation2 + $0x220] ss:$8 sps:$4 sm:$0xff]  }
  0x2b   :  { %v1399_v10 = vld [vmem:[#allocation2 + $0xf0] ss:$8 sps:$4 sm:$0xff]   ;;  %v1407_v11 = vld [vmem:[#allocation2 + $0x304] ss:$8 sps:$4 sm:$0xff]   ;;  %v1378_v12 = vld [vmem:[#allocation2 + $0x234] ss:$8 sps:$4 sm:$0xff]  }
  0x2c   :  { %760 = vmatpush1.bf16.msra.mxu1 %v1337_v28  ;;  %v1376_v13 = vld [vmem:[#allocation2 + $0x230] ss:$8 sps:$4 sm:$0xff]   ;;  %v1405_v15 = vld [vmem:[#allocation2 + $0x300] ss:$8 sps:$4 sm:$0xff]   ;;  %v1413_v16 = vld [vmem:[#allocation2 + $0x314] ss:$8 sps:$4 sm:$0xff]  }
  0x2d   :  { %803 = vmatpush1.bf16.msra.mxu0 %v1301_v21  ;;  %761 = vmatprep.subr.bf16.mxu1 %v1341_v30  ;;  %v1582_v17 = vld [vmem:[%s1657_s0 + $0x10] sm:$0xff]  ;;  %v1384_v18 = vld [vmem:[#allocation2 + $0x244] ss:$8 sps:$4 sm:$0xff]   ;;  %v1382_v21 = vld [vmem:[#allocation2 + $0x240] ss:$8 sps:$4 sm:$0xff]   ;;  %v1523_v24 = vmov 0  }
  0x2e   :  { %804 = vmatprep.subr.bf16.mxu0 %v1302_v23  ;;  %v1411_v19 = vld [vmem:[#allocation2 + $0x310] ss:$8 sps:$4 sm:$0xff]   ;;  %v1113_v20 = vcombine.high %v1582_v17, %v1582_v17  ;;  %v1419_v22 = vld [vmem:[#allocation2 + $0x324] ss:$8 sps:$4 sm:$0xff]   ;;  %v1390_v23 = vld [vmem:[#allocation2 + $0x254] ss:$8 sps:$4 sm:$0xff]  }
  0x2f   :  { %v1388_v26 = vld [vmem:[#allocation2 + $0x250] ss:$8 sps:$4 sm:$0xff]   ;;  %v1396_v28 = vld [vmem:[#allocation2 + $0x264] ss:$8 sps:$4 sm:$0xff]   ;;  %v1394_v30 = vld [vmem:[#allocation2 + $0x260] ss:$8 sps:$4 sm:$0xff]  }
  0x30   :  { %762 = vmatpush1.bf16.msra.mxu1 %v1343_v34  ;;  %v1402_v32 = vld [vmem:[#allocation2 + $0x274] ss:$8 sps:$4 sm:$0xff]   ;;  %v1400_v34 = vld [vmem:[#allocation2 + $0x270] ss:$8 sps:$4 sm:$0xff]   ;;  %v1444_v55 = vld [vmem:[#allocation2 + $0x2e0] ss:$8 sps:$4 sm:$0xff]  }
  0x31   :  { %805 = vmatpush1.bf16.msra.mxu0 %v1304_v25  ;;  %763 = vmatprep.subr.bf16.mxu1 %v1347_v36  ;;  %v1417_v25 = vld [vmem:[#allocation2 + $0x320] ss:$8 sps:$4 sm:$0xff]   ;;  %v1437_v35 = vld [vmem:[#allocation2 + $0x354] ss:$8 sps:$4 sm:$0xff]   ;;  %v1410_v36 = vld [vmem:[#allocation2 + $0x284] ss:$8 sps:$4 sm:$0xff]  }
  0x32   :  { %806 = vmatprep.subr.bf16.mxu0 %v1308_v27  ;;  %v1425_v27 = vld [vmem:[#allocation2 + $0x334] ss:$8 sps:$4 sm:$0xff]   ;;  %v1450_v57 = vld [vmem:[#allocation2 + $0x2f0] ss:$8 sps:$4 sm:$0xff]   ;;  %s1494_s22 = scalar_lea.vmem %s1100_s21, 128 }
  0x33   :  { %p1495_p8 = scmp.ne.s32.totalorder %s1100_s21, %s1494_s22  ;;  %p1500_p10 = scmp.lt.s32.totalorder %s1494_s22, %s1494_s22 }
  0x34   :  { %764 = vmatpush1.bf16.msra.mxu1 %v1349_v39  ;;  %v1443_v39 = vld [vmem:[#allocation2 + $0x364] ss:$8 sps:$4 sm:$0xff]  }
  0x35   :  { %807 = vmatpush1.bf16.msra.mxu0 %v1310_v29  ;;  %765 = vmatprep.subr.bf16.mxu1 %v1353_v40  ;;  %v1423_v29 = vld [vmem:[#allocation2 + $0x330] ss:$8 sps:$4 sm:$0xff]   ;;  %v1416_v40 = vld [vmem:[#allocation2 + $0x294] ss:$8 sps:$4 sm:$0xff]   ;;  %p1501_p11 = por %p1500_p10, %p1499_p9 }
  0x36   :  { %808 = vmatprep.subr.bf16.mxu0 %v1314_v31  ;;  %v1431_v31 = vld [vmem:[#allocation2 + $0x344] ss:$8 sps:$4 sm:$0xff]  }
  0x37   :  { %p1502_p12 = pnand %p1501_p11, %p1495_p8 }
  0x38   :  { %766 = vmatpush1.bf16.msra.mxu1 %v1355_v43  ;;  %v1449_v43 = vld [vmem:[#allocation2 + $0x374] ss:$8 sps:$4 sm:$0xff]  }
  0x39   :  { %809 = vmatpush1.bf16.msra.mxu0 %v1316_v33  ;;  %767 = vmatprep.subr.bf16.mxu1 %v1361_v44  ;;  %v1429_v33 = vld [vmem:[#allocation2 + $0x340] ss:$8 sps:$4 sm:$0xff]   ;;  %v1422_v44 = vld [vmem:[#allocation2 + $0x2a4] ss:$8 sps:$4 sm:$0xff]  }
  0x3a   :  { %810 = vmatprep.subr.bf16.mxu0 %v1320_v37  ;;  %v1435_v37 = vld [vmem:[#allocation2 + $0x350] ss:$8 sps:$4 sm:$0xff]  }
  0x3c   :  { %768 = vmatpush1.bf16.msra.mxu1 %v1363_v47  ;;  %v1428_v47 = vld [vmem:[#allocation2 + $0x2b4] ss:$8 sps:$4 sm:$0xff]  }
  0x3d   :  { %811 = vmatpush1.bf16.msra.mxu0 %v1322_v38  ;;  %769 = vmatprep.subr.bf16.mxu1 %v1367_v48  ;;  %v1408_v38 = vld [vmem:[#allocation2 + $0x280] ss:$8 sps:$4 sm:$0xff]   ;;  %v1455_v48 = vld [vmem:[%s1657_s0 + $0x18] ss:$0 sps:$4 sm:$0xff]  }
  0x3e   :  { %812 = vmatprep.subr.bf16.mxu0 %v1326_v41  ;;  %v1441_v41 = vld [vmem:[#allocation2 + $0x360] ss:$8 sps:$4 sm:$0xff]  }
  0x40   :  { %770 = vmatpush1.bf16.msra.mxu1 %v1369_v51  ;;  %v1432_v51 = vld [vmem:[#allocation2 + $0x2c0] ss:$8 sps:$4 sm:$0xff]  }
  0x41   :  { %813 = vmatpush1.bf16.msra.mxu0 %v1328_v42  ;;  %771 = vmatprep.subr.bf16.mxu1 %v1373_v52  ;;  %v1414_v42 = vld [vmem:[#allocation2 + $0x290] ss:$8 sps:$4 sm:$0xff]   ;;  %v1440_v52 = vld [vmem:[#allocation2 + $0x2d4] ss:$8 sps:$4 sm:$0xff]  }
  0x42   :  { %814 = vmatprep.subr.bf16.mxu0 %v1332_v45  ;;  %v1447_v45 = vld [vmem:[#allocation2 + $0x370] ss:$8 sps:$4 sm:$0xff]  }
  0x44   :  { %772 = vmatpush1.bf16.msra.mxu1 %v1375_v56  ;;  %v1452_v56 = vld [vmem:[#allocation2 + $0x2f4] ss:$8 sps:$4 sm:$0xff]  }
  0x45   :  { %815 = vmatpush1.bf16.msra.mxu0 %v1334_v46  ;;  %773 = vmatprep.subr.bf16.mxu1 %v1379_v58  ;;  %v1420_v46 = vld [vmem:[#allocation2 + $0x2a0] ss:$8 sps:$4 sm:$0xff]   ;;  %v1112_v58 = vcombine.low %v1582_v17, %v1582_v17 }
  0x46   :  { %816 = vmatprep.subr.bf16.mxu0 %v1338_v49  ;;  %v1426_v49 = vld [vmem:[#allocation2 + $0x2b0] ss:$8 sps:$4 sm:$0xff]  }
  0x48   :  { %774 = vmatpush1.bf16.msra.mxu1 %v1381_v61  ;;  %v1458_v61 = vld [vmem:[%s1660_s3 + $0x48] sm:$0xff]  }
  0x49   :  { %817 = vmatpush1.bf16.msra.mxu0 %v1340_v50  ;;  %775 = vmatprep.subr.bf16.mxu1 %v1385_v62  ;;  %v1434_v50 = vld [vmem:[#allocation2 + $0x2c4] ss:$8 sps:$4 sm:$0xff]  }
  0x4a   :  { %818 = vmatprep.subr.bf16.mxu0 %v1344_v53  ;;  %v1438_v53 = vld [vmem:[#allocation2 + $0x2d0] ss:$8 sps:$4 sm:$0xff]   ;;  %v1459_v62 = vld [vmem:[%s1660_s3 + $0x8] sm:$0xff]  }
  0x4c   :  { %776 = vmatpush1.bf16.msra.mxu1 %v1387_v2  ;;  %v1463_v2 = vld [vmem:[%s1660_s3 + $0x18] sm:$0xff]  }
  0x4d   :  { %819 = vmatpush1.bf16.msra.mxu0 %v1346_v54  ;;  %777 = vmatprep.subr.bf16.mxu1 %v1391_v3  ;;  %v1446_v54 = vld [vmem:[#allocation2 + $0x2e4] ss:$8 sps:$4 sm:$0xff]  }
  0x4e   :  { %820 = vmatprep.subr.bf16.mxu0 %v1350_v59  ;;  %v1456_v59 = vld [vmem:[%s1660_s3 + $0x40] sm:$0xff]  }
  0x4f   :  { %v1464_v3 = vld [vmem:[%s1660_s3 + $0x60] sm:$0xff]  }
  0x50   :  { %778 = vmatpush1.bf16.msra.mxu1 %v1393_v6  ;;  %v1467_v6 = vld [vmem:[%s1660_s3 + $0x28] sm:$0xff]  }
  0x51   :  { %821 = vmatpush1.bf16.msra.mxu0 %v1352_v60  ;;  %779 = vmatprep.subr.bf16.mxu1 %v1397_v7  ;;  %v1457_v60 = vld [vmem:[%s1660_s3] sm:$0xff]   ;;  %v1468_v7 = vld [vmem:[%s1660_s3 + $0x70] sm:$0xff]  }
  0x52   :  { %831 = vmatprep.subr.bf16.mxu0 %v1360_v63  ;;  %v1460_v63 = vld [vmem:[%s1660_s3 + $0x50] sm:$0xff]  }
  0x54   :  { %823 = vmatmul.mubr.bf16.vlgmr.msra.gmra.mrb[0].mxu0 %v1110_v1  ;;  %780 = vmatpush1.bf16.msra.mxu1 %v1399_v10  ;;  %v1462_v1 = vld [vmem:[%s1660_s3 + $0x58] sm:$0xff]  }
  0x55   :  { %832 = vmatpush1.bf16.msra.mxu0 %v1358_v0  ;;  %872 = vmatprep.subr.bf16.mxu1 %v1407_v11  ;;  %v1461_v0 = vld [vmem:[%s1660_s3 + $0x10] sm:$0xff]   ;;  %v1471_v10 = vld [vmem:[%s1660_s3 + $0x38] sm:$0xff]  }
  0x56   :  { %833 = vmatprep.subr.bf16.mxu0 %v1366_v4  ;;  %863 = vmatprep.mubr.bf16.mxu0 %v1113_v20  ;;  %v1465_v4 = vld [vmem:[%s1660_s3 + $0x20] sm:$0xff]  }
  0x57   :  { %782 = vmatmul.mubr.bf16.vlgmr.msra.gmra.mrb[0].mxu1 %v1108_v14 }
  0x58   :  { %873 = vmatpush1.bf16.msra.mxu1 %v1405_v15  ;;  %904 = vmatprep.mubr.bf16.mxu1 %v1523_v24 }
  0x59   :  { %834 = vmatpush1.bf16.msra.mxu0 %v1364_v5  ;;  %874 = vmatprep.subr.bf16.mxu1 %v1413_v16  ;;  %v1466_v5 = vld [vmem:[%s1660_s3 + $0x68] sm:$0xff]  }
  0x5a   :  { %835 = vmatprep.subr.bf16.mxu0 %v1372_v8  ;;  %v1469_v8 = vld [vmem:[%s1660_s3 + $0x30] sm:$0xff]  }
  0x5c   :  { %875 = vmatpush1.bf16.msra.mxu1 %v1411_v19  ;;  %v154_v19 = vlaneseq }
  0x5d   :  { %836 = vmatpush1.bf16.msra.mxu0 %v1370_v9  ;;  %876 = vmatprep.subr.bf16.mxu1 %v1419_v22  ;;  %v1470_v9 = vld [vmem:[%s1660_s3 + $0x78] sm:$0xff]   ;;  %v152_v22 = vld [vmem:[%s1659_s2] sm:$0x3] }
  0x5e   :  { %837 = vmatprep.subr.bf16.mxu0 %v1378_v12  ;;  %v155_v20 = vshrl.u32 %v154_v19, 7 }
  0x60   :  { %877 = vmatpush1.bf16.msra.mxu1 %v1417_v25 }
  0x61   :  { %838 = vmatpush1.bf16.msra.mxu0 %v1376_v13  ;;  %878 = vmatprep.subr.bf16.mxu1 %v1425_v27 }
  0x62   :  { %839 = vmatprep.subr.bf16.mxu0 %v1384_v18 }
  0x64   :  { %879 = vmatpush1.bf16.msra.mxu1 %v1423_v29 }
  0x65   :  { %840 = vmatpush1.bf16.msra.mxu0 %v1382_v21  ;;  %880 = vmatprep.subr.bf16.mxu1 %v1431_v31  ;;  %v156_v21 = vsub.s32 0, %v155_v20 }
  0x66   :  { %841 = vmatprep.subr.bf16.mxu0 %v1390_v23  ;;  %v160_v23 = vsub.s32 1, %v155_v20 }
  0x67   :  { %v157_v24 = vrot.slane %v152_v22, %v156_v21 }
  0x68   :  { %881 = vmatpush1.bf16.msra.mxu1 %v1429_v33  ;;  %v161_v25 = vrot.slane %v152_v22, %v160_v23 }
  0x69   :  { %842 = vmatpush1.bf16.msra.mxu0 %v1388_v26  ;;  %882 = vmatprep.subr.bf16.mxu1 %v1437_v35 }
  0x6a   :  { %843 = vmatprep.subr.bf16.mxu0 %v1396_v28 }
  0x6c   :  { %883 = vmatpush1.bf16.msra.mxu1 %v1435_v37 }
  0x6d   :  { %844 = vmatpush1.bf16.msra.mxu0 %v1394_v30  ;;  %884 = vmatprep.subr.bf16.mxu1 %v1443_v39 }
  0x6e   :  { %845 = vmatprep.subr.bf16.mxu0 %v1402_v32 }
  0x70   :  { %885 = vmatpush1.bf16.msra.mxu1 %v1441_v41  ;;  %v1227_v41 = vld [vmem:[%s1661_s4] ss:$0 sm:$0xff] }
  0x71   :  { %846 = vmatpush1.bf16.msra.mxu0 %v1400_v34  ;;  %886 = vmatprep.subr.bf16.mxu1 %v1449_v43 }
  0x72   :  { %847 = vmatprep.subr.bf16.mxu0 %v1410_v36 }
  0x74   :  { %887 = vmatpush1.bf16.msra.mxu1 %v1447_v45 }
  0x75   :  { %848 = vmatpush1.bf16.msra.mxu0 %v1408_v38  ;;  %1244 = vmatprep.subr.bf16.mxu1 %v1456_v59 }
  0x76   :  { %849 = vmatprep.subr.bf16.mxu0 %v1416_v40 }
  0x77   :  { %905 = vmatmul.mubr.bf16.vlgmr.msra.gmra.mrb[4].mxu1 %v1455_v48 }
  0x78   :  { %1245 = vmatpush3.bf16.msra.mxu1 %v1457_v60 }
  0x79   :  { %850 = vmatpush1.bf16.msra.mxu0 %v1414_v42  ;;  %1246 = vmatprep.subr.bf16.mxu1 %v1458_v61 }
  0x7a   :  { %851 = vmatprep.subr.bf16.mxu0 %v1422_v44 }
  0x7c   :  { %1247 = vmatpush3.bf16.msra.mxu1 %v1459_v62 }
  0x7d   :  { %852 = vmatpush1.bf16.msra.mxu0 %v1420_v46  ;;  %1248 = vmatprep.subr.bf16.mxu1 %v1460_v63 }
  0x7e   :  { %853 = vmatprep.subr.bf16.mxu0 %v1428_v47 }
  0x80   :  { %1249 = vmatpush3.bf16.msra.mxu1 %v1461_v0 }
  0x81   :  { %854 = vmatpush1.bf16.msra.mxu0 %v1426_v49  ;;  %1250 = vmatprep.subr.bf16.mxu1 %v1462_v1 }
  0x82   :  { %855 = vmatprep.subr.bf16.mxu0 %v1434_v50 }
  0x84   :  { %1251 = vmatpush3.bf16.msra.mxu1 %v1463_v2 }
  0x85   :  { %856 = vmatpush1.bf16.msra.mxu0 %v1432_v51  ;;  %1252 = vmatprep.subr.bf16.mxu1 %v1464_v3 }
  0x86   :  { %857 = vmatprep.subr.bf16.mxu0 %v1440_v52 }
  0x88   :  { %1253 = vmatpush3.bf16.msra.mxu1 %v1465_v4 }
  0x89   :  { %858 = vmatpush1.bf16.msra.mxu0 %v1438_v53  ;;  %1254 = vmatprep.subr.bf16.mxu1 %v1466_v5 }
  0x8a   :  { %859 = vmatprep.subr.bf16.mxu0 %v1446_v54 }
  0x8c   :  { %1255 = vmatpush3.bf16.msra.mxu1 %v1467_v6 }
  0x8d   :  { %860 = vmatpush1.bf16.msra.mxu0 %v1444_v55  ;;  %1256 = vmatprep.subr.bf16.mxu1 %v1468_v7 }
  0x8e   :  { %861 = vmatprep.subr.bf16.mxu0 %v1452_v56 }
  0x90   :  { %1257 = vmatpush3.bf16.msra.mxu1 %v1469_v8 }
  0x91   :  { %862 = vmatpush1.bf16.msra.mxu0 %v1450_v57  ;;  %1258 = vmatprep.subr.bf16.mxu1 %v1470_v9 }
  0x94   :  { %864 = vmatmul.mubr.bf16.vlgmr.msra.gmra.mrb[0].mxu0 %v1112_v58  ;;  %1259 = vmatpush3.bf16.msra.mxu1 %v1471_v10 }
 0x12a   :  { %v783_v11 = vpop.f32.mrb[0].mxu1 }
 0x12b   :  { %v785_v12 = vpop.f32.mrb[1].mxu1  ;;  %v784_v26 = vadd.f32 %v783_v11, %v157_v24 }
 0x12c   :  { %v787_v13 = vpop.f32.mrb[2].mxu1  ;;  %v786_v27 = vadd.f32 %v785_v12, %v161_v25 }
 0x12d   :  { %v788_v14 = vpop.f32.mrb[3].mxu1 }
 0x14a   :  { %v906_v15 = vpop.f32.mrb[4].mxu1 }
 0x14b   :  { %v908_v16 = vpop.f32.mrb[5].mxu1 }
 0x14c   :  { %v910_v17 = vpop.f32.mrb[6].mxu1 }
 0x14d   :  { %v911_v18 = vpop.f32.mrb[7].mxu1 }
 0x167   :  { %v865_v28 = vpop.f32.mrb[0].mxu0 }
 0x168   :  { %v1267_v29 = vadd.f32 %v865_v28, %v784_v26  ;;  %v867_v30 = vpop.f32.mrb[1].mxu0 }
 0x169   :  { %v1270_v31 = vadd.f32 %v867_v30, %v786_v27  ;;  %v869_v32 = vpop.f32.mrb[2].mxu0 }
 0x16a   :  { %v1268_v33 = vadd.f32 %v1267_v29, %v906_v15  ;;  %v870_v34 = vpop.f32.mrb[3].mxu0 }
 0x16b   :  { %v1271_v35 = vadd.f32 %v1270_v31, %v908_v16 }
 0x16c   :  { %v913_v36 = vmax.f32 %v1268_v33, 0.0 }
 0x16d   :  { %v914_v37 = vmax.f32 %v1271_v35, 0.0 }
 0x16e   :  { %v915_v39 = vpack.c.bf16 %v913_v36, %v913_v36 }
 0x16f   :  { %v916_v38 = vpack.c.bf16 %v914_v37, %v914_v37 }
 0x171   :  { %1084 = vmatprep.mubr.bf16.mxu1 %v916_v38 }
 0x172   :  { %1085 = vmatmul.mubr.bf16.vlgmr.msra.gmra.mrb[8].mxu1 %v915_v39 }
 0x245   :  { %v1260_v40 = vpop.f32.mrb[8].mxu1 }
 0x246   :  { %v1261_v42 = vpop.f32.mrb[9].mxu1 }
 0x247   :  { %v1262_v43 = vadd.f32 %v1261_v42, %v1260_v40  ;;  %v1263_v44 = vpop.f32.mrb[10].mxu1 }
 0x248   :  { %v1264_v45 = vpop.f32.mrb[11].mxu1 }
 0x249   :  { %v1087_v46 = vadd.f32 %v1262_v43, %v1227_v41 }
 0x24b   :  { %1092 = vst [vmem:[#allocation5] sm:$0xff] %v1087_v46 }
 0x24c   :  { %1505 = shalt.err (!%p1502_p12)
}
 0x24d   :  { %s1506_s4 = scalar_lea.hbm %s1662_s5, 128 }
 0x24e   :  { %p1507_p13 = scmp.ne.s32.totalorder %s1662_s5, %s1506_s4  ;;  %p1510_p0 = scmp.lt.u32.totalorder %s1506_s4, %s1662_s5 }
 0x250   :  { %p1512_p1 = pnand %p1510_p0, %p1507_p13 }
 0x252   :  { %1515 = shalt.err (!%p1512_p1)
}
 0x253   :  { %1102 = dma.vmem_to_hbm [thread:$0]  %s1100_s21, 128, %s1662_s5, [#allocation4]  }
 0x254   :  { %1518 = dma.done.wait [#allocation4], 128  }
 0x255   :  { %1519 = vsyncadd [#allocation4], 4294967168 }
 0x256   :  { %1106 = vsyncpa [#allocation3], 1 }
 0x257   :  { %1107 = vsyncpa [#allocation4], 1 }

</bundles_post_ra>
